<compile_context>
chip_gen: v5e
topology: v5e:2x2
jax: 0.10.0
libtpu: 0.0.40
codegen_flags: <defaults>
</compile_context>

<pallas_src>
import functools

import jax
import jax.numpy as jnp
from jax.experimental import pallas as pl
from jax.experimental.pallas import tpu as pltpu


_INV_SQRT2 = 0.7071067811865476
_SQRT_2_OVER_PI = 0.7978845608028654

# explicit capability check (review: no silent fallback that doubles VMEM use)
_HAS_BUFFERED = hasattr(pl, "Buffered")


def _gelu(x, approx=False):
    if approx:
        # tanh approximation -> EUP slot; only when exact torch parity not needed
        return 0.5 * x * (1.0 + jnp.tanh(
            jnp.float32(_SQRT_2_OVER_PI) * (x + 0.044715 * x * x * x)))
    # matches torch.nn.GELU() default (erf-based)
    return 0.5 * x * (1.0 + jax.lax.erf(x * jnp.float32(_INV_SQRT2)))


def _round_up(v, m):
    return (v + m - 1) // m * m


# ---------------------------------------------------------------------------
# kernels
# ---------------------------------------------------------------------------
def _dense(a, w_ref, b_ref):
    # MXU matmul in the weights' dtype (bf16 fast path / f32 check path),
    # f32 accumulation, bias add in f32.
    return (jnp.dot(a.astype(w_ref.dtype), w_ref[...],
                    preferred_element_type=jnp.float32) + b_ref[...])


def _vae_fused_kernel(x_ref, eps_ref,
                      w1_ref, b1_ref, w2_ref, b2_ref, w3_ref, b3_ref,
                      w4_ref, b4_ref, w5_ref, b5_ref, w6_ref, b6_ref,
                      out_ref, *, Lp, gelu_approx):
    f32 = jnp.float32
    x = x_ref[...].astype(f32)

    # encoder: Linear -> GELU -> Linear -> GELU -> Linear(mu|logvar fused)
    h = _gelu(_dense(x, w1_ref, b1_ref), gelu_approx)
    h = _gelu(_dense(h, w2_ref, b2_ref), gelu_approx)
    enc = _dense(h, w3_ref, b3_ref)            # (tile_m, 2*Lp): [mu | logvar]
    mu = enc[:, :Lp]                           # 128-lane-aligned slice
    logvar = enc[:, Lp:]

    # reparameterization: z = mu + eps * exp(0.5 * logvar)
    z = mu + eps_ref[...].astype(f32) * jnp.exp(0.5 * logvar)

    # decoder: Linear -> GELU -> Linear -> GELU -> Linear
    d = _gelu(_dense(z, w4_ref, b4_ref), gelu_approx)
    d = _gelu(_dense(d, w5_ref, b5_ref), gelu_approx)
    out_ref[...] = _dense(d, w6_ref, b6_ref).astype(out_ref.dtype)


def _vae_encoder_kernel(x_ref, eps_ref,
                        w1_ref, b1_ref, w2_ref, b2_ref, w3_ref, b3_ref,
                        z_ref, *, Lp, gelu_approx):
    f32 = jnp.float32
    x = x_ref[...].astype(f32)
    h = _gelu(_dense(x, w1_ref, b1_ref), gelu_approx)
    h = _gelu(_dense(h, w2_ref, b2_ref), gelu_approx)
    enc = _dense(h, w3_ref, b3_ref)
    mu = enc[:, :Lp]
    logvar = enc[:, Lp:]
    z = mu + eps_ref[...].astype(f32) * jnp.exp(0.5 * logvar)
    z_ref[...] = z.astype(z_ref.dtype)


def _vae_decoder_kernel(z_ref,
                        w4_ref, b4_ref, w5_ref, b5_ref, w6_ref, b6_ref,
                        out_ref, *, gelu_approx):
    f32 = jnp.float32
    z = z_ref[...].astype(f32)
    d = _gelu(_dense(z, w4_ref, b4_ref), gelu_approx)
    d = _gelu(_dense(d, w5_ref, b5_ref), gelu_approx)
    out_ref[...] = _dense(d, w6_ref, b6_ref).astype(out_ref.dtype)


# ---------------------------------------------------------------------------
# parameter preparation (hoisted out of the per-forward hot path)
# ---------------------------------------------------------------------------
def prepare_padded_params(params, latent_dim, *, matmul_dtype=jnp.bfloat16,
                          lane_align=128):
    """Pad (and cast) all weights/biases once.

    Linear params are stored (in, out) so the kernel does x @ W directly.
    Zero padding is exact: padded weight rows/cols, biases and eps lanes are
    zero, so padded channels never leak into real outputs (padded logvar lanes
    give exp(0)=1 but their eps lanes are zero, so padded z stays 0)."""
    (w1, b1), (w2, b2), (w3, b3), (w4, b4), (w5, b5), (w6, b6) = params
    H = int(w1.shape[0])
    L = int(latent_dim)

    Hp = _round_up(H, lane_align)
    H2p = _round_up(H // 2, lane_align)
    H4p = _round_up(H // 4, lane_align)
    Lp = _round_up(L, lane_align)

    def pad2(a, rows, cols):
        return jnp.pad(a, ((0, rows - a.shape[0]), (0, cols - a.shape[1])))

    mmd = jnp.dtype(matmul_dtype)
    f32 = jnp.float32

    # fused (mu | logvar) projection: pad each half to Lp lanes, then concat so
    # the in-kernel slice boundary sits exactly at lane Lp (a 128 multiple).
    w3m, w3v = w3[:, :L], w3[:, L:]
    b3m, b3v = b3[:, :L], b3[:, L:]
    w3p = jnp.concatenate([pad2(w3m, H4p, Lp), pad2(w3v, H4p, Lp)], axis=1)
    b3p = jnp.concatenate([pad2(b3m, 1, Lp), pad2(b3v, 1, Lp)], axis=1)

    enc_weights = [
        pad2(w1, Hp, H2p).astype(mmd), pad2(b1, 1, H2p).astype(f32),
        pad2(w2, H2p, H4p).astype(mmd), pad2(b2, 1, H4p).astype(f32),
        w3p.astype(mmd), b3p.astype(f32),
    ]
    dec_weights = [
        pad2(w4, Lp, H4p).astype(mmd), pad2(b4, 1, H4p).astype(f32),
        pad2(w5, H4p, H2p).astype(mmd), pad2(b5, 1, H2p).astype(f32),
        pad2(w6, H2p, Hp).astype(mmd), pad2(b6, 1, Hp).astype(f32),
    ]

    nbytes = lambda arrs: sum(int(a.size) * a.dtype.itemsize for a in arrs)
    return {
        "H": H, "L": L, "Hp": Hp, "H2p": H2p, "H4p": H4p, "Lp": Lp,
        "matmul_dtype": mmd,
        "enc_weights": enc_weights, "dec_weights": dec_weights,
        "enc_bytes": nbytes(enc_weights), "dec_bytes": nbytes(dec_weights),
    }


# ---------------------------------------------------------------------------
# tiling / budgeting helpers
# ---------------------------------------------------------------------------
def _default_vmem_limit_bytes():
    """Generation-aware VMEM budget: physical per-core VMEM minus ~16 MiB of
    headroom for Mosaic scratch (~112 MiB on v5e/v6e, ~48 MiB on v7x)."""
    phys = None
    if hasattr(pltpu, "get_tpu_info"):
        try:  # hardware-info query only; kernel compile errors still fail loudly
            phys = getattr(pltpu.get_tpu_info(), "vmem_capacity_bytes", None)
        except Exception:
            phys = None
    if not phys:
        phys = 64 << 20        # conservative default (v7x per-TensorCore VMEM)
    return max(32 << 20, int(phys) - (16 << 20))


def _pick_tiling(N, resident_bytes, row_bytes, vmem_limit, tile_m=None,
                 max_tile=2048):
    auto = tile_m is None
    if auto:
        budget = int(vmem_limit) - int(resident_bytes) - (4 << 20)
        cap = max(8, (budget // max(int(row_bytes), 1)) // 8 * 8)
        tile_m = min(max_tile, cap, _round_up(N, 8))
    tile_m = max(8, (int(tile_m) // 8) * 8)
    tile_m = min(tile_m, _round_up(N, 8))
    grid_m = pl.cdiv(N, tile_m)
    # keep both v7x TensorCores busy and balanced under ("parallel",): prefer an
    # even grid whenever there is more than one minimal tile of work.
    if auto and N > 8 and grid_m % 2 == 1:
        tile_m = max(8, _round_up(pl.cdiv(N, grid_m + 1), 8))
        grid_m = pl.cdiv(N, tile_m)
    Np = grid_m * tile_m
    return int(tile_m), int(grid_m), int(Np)


def _bcast_spec(shape):
    bmap = lambda i: (0, 0)
    if _HAS_BUFFERED:
        # weights/biases are grid-invariant: keep a single resident copy instead
        # of the default double buffer (matters on v7x's 64 MiB VMEM).
        return pl.BlockSpec(shape, bmap, pipeline_mode=pl.Buffered(1))
    return pl.BlockSpec(shape, bmap)


def _run_tiled(kernel, token_arrays, weight_arrays, out_cols, out_dtype,
               tile_m, grid_m, Np, vmem_limit, cost):
    tok_map = lambda i: (i, 0)
    in_specs = [pl.BlockSpec((tile_m, int(a.shape[1])), tok_map)
                for a in token_arrays]
    in_specs += [_bcast_spec(w.shape) for w in weight_arrays]
    return pl.pallas_call(
        kernel,
        out_shape=jax.ShapeDtypeStruct((Np, out_cols), out_dtype),
        grid_spec=pltpu.PrefetchScalarGridSpec(
            num_scalar_prefetch=0,
            grid=(grid_m,),
            in_specs=in_specs,
            out_specs=pl.BlockSpec((tile_m, out_cols), tok_map),
        ),
        compiler_params=pltpu.CompilerParams(
            dimension_semantics=("parallel",),
            vmem_limit_bytes=int(vmem_limit)),
        cost_estimate=cost,
    )(*token_arrays, *weight_arrays)


# ---------------------------------------------------------------------------
# forward
# ---------------------------------------------------------------------------
def generative_model_forward(x, eps, prepared, *, tile_m=None,
                             vmem_limit_bytes=None, gelu_approx=False,
                             split_encoder_decoder=None):
    """x: (B, S, H); eps: (B, S, latent_dim) reparameterization noise.
    `prepared` comes from prepare_padded_params().  Returns (B, S, H)."""
    B, S, H = x.shape
    assert H == prepared["H"], "hidden size mismatch with prepared params"
    L = prepared["L"]
    Hp, H2p, H4p, Lp = (prepared[k] for k in ("Hp", "H2p", "H4p", "Lp"))
    mmd = prepared["matmul_dtype"]
    N = B * S
    out_dtype = x.dtype

    if vmem_limit_bytes is None:
        vmem_limit_bytes = _default_vmem_limit_bytes()

    enc_w, dec_w = prepared["enc_weights"], prepared["dec_weights"]
    enc_bytes, dec_bytes = prepared["enc_bytes"], prepared["dec_bytes"]
    buf_factor = 1 if _HAS_BUFFERED else 2
    total_w_bytes = (enc_bytes + dec_bytes) * buf_factor

    if split_encoder_decoder is None:
        # v7x-style fallback: if all-resident weights would eat most of VMEM,
        # run encoder+reparam and decoder as separate calls (half resident each).
        split_encoder_decoder = total_w_bytes > int(0.45 * vmem_limit_bytes)
    # TODO(synk): for very large hidden sizes (H >= ~8192 on v7x) additionally
    # stream w1/w6 over a K-tiled grid axis instead of keeping them resident.

    in_size = jnp.dtype(mmd).itemsize          # bf16 inputs on the fast path
    out_size = jnp.dtype(out_dtype).itemsize

    if not split_encoder_decoder:
        # peak live f32 activations per row + double-buffered I/O rows
        act_row = 4 * (Hp + H2p + H4p + 2 * Lp)
        io_row = 2 * (Hp + Lp) * in_size + 2 * Hp * out_size
        tm, gm, Np = _pick_tiling(N, total_w_bytes, act_row + io_row,
                                  vmem_limit_bytes, tile_m)
        x2 = jnp.pad(x.reshape(N, H).astype(mmd), ((0, Np - N), (0, Hp - H)))
        eps2 = jnp.pad(eps.reshape(N, L).astype(mmd), ((0, Np - N), (0, Lp - L)))

        macs = (Hp * H2p + H2p * H4p + H4p * 2 * Lp
                + Lp * H4p + H4p * H2p + H2p * Hp)
        cost = pl.CostEstimate(
            flops=int(2 * Np * macs),
            transcendentals=int(Np * (2 * (H2p + H4p) + Lp)),
            bytes_accessed=int((enc_bytes + dec_bytes)
                               + x2.size * x2.dtype.itemsize
                               + eps2.size * eps2.dtype.itemsize
                               + Np * Hp * out_size))
        kernel = functools.partial(_vae_fused_kernel, Lp=Lp,
                                   gelu_approx=gelu_approx)
        out2 = _run_tiled(kernel, [x2, eps2], enc_w + dec_w, Hp, out_dtype,
                          tm, gm, Np, vmem_limit_bytes, cost)
        return out2[:N, :H].reshape(B, S, H)

    # ---- split path: encoder+reparam call, then decoder call -----------------
    z_dtype = mmd   # fused path would cast z to mmd before the w4 matmul anyway
    z_size = jnp.dtype(z_dtype).itemsize
    act_enc = 4 * (Hp + H2p + H4p + 2 * Lp)
    io_enc = 2 * (Hp + Lp) * in_size + 2 * Lp * z_size
    act_dec = 4 * (Lp + H4p + H2p + Hp)
    io_dec = 2 * Lp * z_size + 2 * Hp * out_size
    resident = max(enc_bytes, dec_bytes) * buf_factor
    row_bytes = max(act_enc + io_enc, act_dec + io_dec)
    tm, gm, Np = _pick_tiling(N, resident, row_bytes, vmem_limit_bytes, tile_m)

    x2 = jnp.pad(x.reshape(N, H).astype(mmd), ((0, Np - N), (0, Hp - H)))
    eps2 = jnp.pad(eps.reshape(N, L).astype(mmd), ((0, Np - N), (0, Lp - L)))

    enc_macs = Hp * H2p + H2p * H4p + H4p * 2 * Lp
    enc_cost = pl.CostEstimate(
        flops=int(2 * Np * enc_macs),
        transcendentals=int(Np * (H2p + H4p + Lp)),
        bytes_accessed=int(enc_bytes + x2.size * x2.dtype.itemsize
                           + eps2.size * eps2.dtype.itemsize + Np * Lp * z_size))
    enc_kernel = functools.partial(_vae_encoder_kernel, Lp=Lp,
                                   gelu_approx=gelu_approx)
    z2 = _run_tiled(enc_kernel, [x2, eps2], enc_w, Lp, z_dtype,
                    tm, gm, Np, vmem_limit_bytes, enc_cost)

    dec_macs = Lp * H4p + H4p * H2p + H2p * Hp
    dec_cost = pl.CostEstimate(
        flops=int(2 * Np * dec_macs),
        transcendentals=int(Np * (H4p + H2p)),
        bytes_accessed=int(dec_bytes + z2.size * z2.dtype.itemsize
                           + Np * Hp * out_size))
    dec_kernel = functools.partial(_vae_decoder_kernel, gelu_approx=gelu_approx)
    out2 = _run_tiled(dec_kernel, [z2], dec_w, Hp, out_dtype,
                      tm, gm, Np, vmem_limit_bytes, dec_cost)
    return out2[:N, :H].reshape(B, S, H)


# ---------------------------------------------------------------------------
# reference + init (for the self-check)
# ---------------------------------------------------------------------------
def init_params(key, hidden_size, latent_dim):
    """Linear params stored (in, out); mimics PyTorch uniform(-1/sqrt(fan_in),...)"""
    dims = [
        (hidden_size, hidden_size // 2),
        (hidden_size // 2, hidden_size // 4),
        (hidden_size // 4, latent_dim * 2),
        (latent_dim, hidden_size // 4),
        (hidden_size // 4, hidden_size // 2),
        (hidden_size // 2, hidden_size),
    ]
    params = []
    for fan_in, fan_out in dims:
        key, kw, kb = jax.random.split(key, 3)
        bound = 1.0 / jnp.sqrt(fan_in)
        w = jax.random.uniform(kw, (fan_in, fan_out), jnp.float32, -bound, bound)
        b = jax.random.uniform(kb, (1, fan_out), jnp.float32, -bound, bound)
        params.append((w, b))
    return params


def _reference_forward(x, eps, params, latent_dim):
    """Pure-JAX f32 reference (same math) for the correctness check."""
    (w1, b1), (w2, b2), (w3, b3), (w4, b4), (w5, b5), (w6, b6) = params
    g = lambda t: 0.5 * t * (1.0 + jax.lax.erf(t / jnp.sqrt(2.0)))
    h = g(x @ w1 + b1)
    h = g(h @ w2 + b2)
    enc = h @ w3 + b3
    mu, logvar = enc[..., :latent_dim], enc[..., latent_dim:]
    z = mu + eps * jnp.exp(0.5 * logvar)
    d = g(z @ w4 + b4)
    d = g(d @ w5 + b5)
    return d @ w6 + b6


if __name__ == "__main__":
    # small shapes consistent with (batch, seq, hidden)
    batch, seq, hidden, latent = 2, 8, 32, 8

    key = jax.random.PRNGKey(0)
    key, kx, keps, kparams = jax.random.split(key, 4)

    x = jax.random.normal(kx, (batch, seq, hidden), jnp.float32)
    # torch.randn_like(std) noise — drawn once here so the kernel is deterministic
    eps = jax.random.normal(keps, (batch, seq, latent), jnp.float32)

    params = init_params(kparams, hidden, latent)
    ref = _reference_forward(x, eps, params, latent)

    # exact-precision path (f32 MXU inputs) — tight check
    prep_f32 = prepare_padded_params(params, latent, matmul_dtype=jnp.float32)
    out_f32 = jax.block_until_ready(generative_model_forward(x, eps, prep_f32))
    assert out_f32.shape == (batch, seq, hidden)
    assert jnp.allclose(out_f32, ref, atol=1e-4, rtol=1e-4), "f32 mismatch vs reference"

    # default fast path (bf16 MXU inputs, f32 accumulation, fused single call)
    prep_bf16 = prepare_padded_params(params, latent, matmul_dtype=jnp.bfloat16)
    out_bf16 = jax.block_until_ready(generative_model_forward(x, eps, prep_bf16))
    assert out_bf16.shape == (batch, seq, hidden)
    assert jnp.allclose(out_bf16, ref, atol=5e-2, rtol=5e-2), "bf16 mismatch vs reference"

    # split encoder/decoder path (large-weight / v7x fallback) — exercised explicitly
    out_split = jax.block_until_ready(
        generative_model_forward(x, eps, prep_bf16, split_encoder_decoder=True))
    assert out_split.shape == (batch, seq, hidden)
    assert jnp.allclose(out_split, ref, atol=5e-2, rtol=5e-2), "split-path mismatch"

    print("KERNEL_OK")
</pallas_src>

<mosaic_0001>
module attributes {stable_mosaic.version = 11 : i64} {
  func.func @_vae_fused_kernel(%arg0: i32, %arg1: memref<8x128xf32, #tpu.memory_space<vmem>>, %arg2: memref<8x128xf32, #tpu.memory_space<vmem>>, %arg3: memref<128x128xf32, #tpu.memory_space<vmem>>, %arg4: memref<1x128xf32, #tpu.memory_space<vmem>>, %arg5: memref<128x128xf32, #tpu.memory_space<vmem>>, %arg6: memref<1x128xf32, #tpu.memory_space<vmem>>, %arg7: memref<128x256xf32, #tpu.memory_space<vmem>>, %arg8: memref<1x256xf32, #tpu.memory_space<vmem>>, %arg9: memref<128x128xf32, #tpu.memory_space<vmem>>, %arg10: memref<1x128xf32, #tpu.memory_space<vmem>>, %arg11: memref<128x128xf32, #tpu.memory_space<vmem>>, %arg12: memref<1x128xf32, #tpu.memory_space<vmem>>, %arg13: memref<128x128xf32, #tpu.memory_space<vmem>>, %arg14: memref<1x128xf32, #tpu.memory_space<vmem>>, %arg15: memref<8x128xf32, #tpu.memory_space<vmem>>) attributes {dimension_semantics = [#tpu.dimension_semantics<parallel>], iteration_bounds = array<i64: 2>, scalar_prefetch = 0 : i64, scratch_operands = 0 : i64, tpu.core_type = #tpu.core_type<tc>, window_params = [{transform_indices = @transform_0, window_bounds = array<i64: 8, 128>}, {transform_indices = @transform_1, window_bounds = array<i64: 8, 128>}, {pipeline_mode = #tpu.pipeline_mode<synchronous>, transform_indices = @transform_2, window_bounds = array<i64: 128, 128>}, {pipeline_mode = #tpu.pipeline_mode<synchronous>, transform_indices = @transform_3, window_bounds = array<i64: 1, 128>}, {pipeline_mode = #tpu.pipeline_mode<synchronous>, transform_indices = @transform_4, window_bounds = array<i64: 128, 128>}, {pipeline_mode = #tpu.pipeline_mode<synchronous>, transform_indices = @transform_5, window_bounds = array<i64: 1, 128>}, {pipeline_mode = #tpu.pipeline_mode<synchronous>, transform_indices = @transform_6, window_bounds = array<i64: 128, 256>}, {pipeline_mode = #tpu.pipeline_mode<synchronous>, transform_indices = @transform_7, window_bounds = array<i64: 1, 256>}, {pipeline_mode = #tpu.pipeline_mode<synchronous>, transform_indices = @transform_8, window_bounds = array<i64: 128, 128>}, {pipeline_mode = #tpu.pipeline_mode<synchronous>, transform_indices = @transform_9, window_bounds = array<i64: 1, 128>}, {pipeline_mode = #tpu.pipeline_mode<synchronous>, transform_indices = @transform_10, window_bounds = array<i64: 128, 128>}, {pipeline_mode = #tpu.pipeline_mode<synchronous>, transform_indices = @transform_11, window_bounds = array<i64: 1, 128>}, {pipeline_mode = #tpu.pipeline_mode<synchronous>, transform_indices = @transform_12, window_bounds = array<i64: 128, 128>}, {pipeline_mode = #tpu.pipeline_mode<synchronous>, transform_indices = @transform_13, window_bounds = array<i64: 1, 128>}, {transform_indices = @transform_14, window_bounds = array<i64: 8, 128>}]} {
    %c0 = arith.constant 0 : index
    %c0_0 = arith.constant 0 : index
    %0 = vector.load %arg1[%c0, %c0_0] : memref<8x128xf32, #tpu.memory_space<vmem>>, vector<8x128xf32>
    %c0_1 = arith.constant 0 : index
    %c0_2 = arith.constant 0 : index
    %1 = vector.load %arg3[%c0_1, %c0_2] : memref<128x128xf32, #tpu.memory_space<vmem>>, vector<128x128xf32>
    %cst = arith.constant dense<0.000000e+00> : vector<8x128xf32>
    %2 = tpu.matmul %0, %1, %cst {dimension_numbers = #tpu.dot_dimension_numbers<[1], [0], [0], [1], [0, 0, 1, 1], [], []>} : vector<8x128xf32>, vector<128x128xf32>, vector<8x128xf32> -> vector<8x128xf32>
    %c0_3 = arith.constant 0 : index
    %c0_4 = arith.constant 0 : index
    %3 = vector.load %arg4[%c0_3, %c0_4] : memref<1x128xf32, #tpu.memory_space<vmem>>, vector<1x128xf32>
    %4 = vector.broadcast %3 : vector<1x128xf32> to vector<8x128xf32>
    %5 = arith.addf %2, %4 : vector<8x128xf32>
    %cst_5 = arith.constant 5.000000e-01 : f32
    %6 = vector.broadcast %cst_5 : f32 to vector<8x128xf32>
    %7 = arith.mulf %6, %5 : vector<8x128xf32>
    %cst_6 = arith.constant 0.707106769 : f32
    %8 = vector.broadcast %cst_6 : f32 to vector<8x128xf32>
    %9 = arith.mulf %5, %8 : vector<8x128xf32>
    %10 = math.erf %9 : vector<8x128xf32>
    %cst_7 = arith.constant 1.000000e+00 : f32
    %11 = vector.broadcast %cst_7 : f32 to vector<8x128xf32>
    %12 = arith.addf %11, %10 : vector<8x128xf32>
    %13 = arith.mulf %7, %12 : vector<8x128xf32>
    %c0_8 = arith.constant 0 : index
    %c0_9 = arith.constant 0 : index
    %14 = vector.load %arg5[%c0_8, %c0_9] : memref<128x128xf32, #tpu.memory_space<vmem>>, vector<128x128xf32>
    %cst_10 = arith.constant dense<0.000000e+00> : vector<8x128xf32>
    %15 = tpu.matmul %13, %14, %cst_10 {dimension_numbers = #tpu.dot_dimension_numbers<[1], [0], [0], [1], [0, 0, 1, 1], [], []>} : vector<8x128xf32>, vector<128x128xf32>, vector<8x128xf32> -> vector<8x128xf32>
    %c0_11 = arith.constant 0 : index
    %c0_12 = arith.constant 0 : index
    %16 = vector.load %arg6[%c0_11, %c0_12] : memref<1x128xf32, #tpu.memory_space<vmem>>, vector<1x128xf32>
    %17 = vector.broadcast %16 : vector<1x128xf32> to vector<8x128xf32>
    %18 = arith.addf %15, %17 : vector<8x128xf32>
    %cst_13 = arith.constant 5.000000e-01 : f32
    %19 = vector.broadcast %cst_13 : f32 to vector<8x128xf32>
    %20 = arith.mulf %19, %18 : vector<8x128xf32>
    %cst_14 = arith.constant 0.707106769 : f32
    %21 = vector.broadcast %cst_14 : f32 to vector<8x128xf32>
    %22 = arith.mulf %18, %21 : vector<8x128xf32>
    %23 = math.erf %22 : vector<8x128xf32>
    %cst_15 = arith.constant 1.000000e+00 : f32
    %24 = vector.broadcast %cst_15 : f32 to vector<8x128xf32>
    %25 = arith.addf %24, %23 : vector<8x128xf32>
    %26 = arith.mulf %20, %25 : vector<8x128xf32>
    %c0_16 = arith.constant 0 : index
    %c0_17 = arith.constant 0 : index
    %27 = vector.load %arg7[%c0_16, %c0_17] : memref<128x256xf32, #tpu.memory_space<vmem>>, vector<128x256xf32>
    %cst_18 = arith.constant dense<0.000000e+00> : vector<8x256xf32>
    %28 = tpu.matmul %26, %27, %cst_18 {dimension_numbers = #tpu.dot_dimension_numbers<[1], [0], [0], [1], [0, 0, 1, 1], [], []>} : vector<8x128xf32>, vector<128x256xf32>, vector<8x256xf32> -> vector<8x256xf32>
    %c0_19 = arith.constant 0 : index
    %c0_20 = arith.constant 0 : index
    %29 = vector.load %arg8[%c0_19, %c0_20] : memref<1x256xf32, #tpu.memory_space<vmem>>, vector<1x256xf32>
    %30 = vector.broadcast %29 : vector<1x256xf32> to vector<8x256xf32>
    %31 = arith.addf %28, %30 : vector<8x256xf32>
    %32 = vector.extract_strided_slice %31 {offsets = [0, 0], sizes = [8, 128], strides = [1, 1]} : vector<8x256xf32> to vector<8x128xf32>
    %33 = vector.extract_strided_slice %31 {offsets = [0, 128], sizes = [8, 128], strides = [1, 1]} : vector<8x256xf32> to vector<8x128xf32>
    %c0_21 = arith.constant 0 : index
    %c0_22 = arith.constant 0 : index
    %34 = vector.load %arg2[%c0_21, %c0_22] : memref<8x128xf32, #tpu.memory_space<vmem>>, vector<8x128xf32>
    %cst_23 = arith.constant 5.000000e-01 : f32
    %35 = vector.broadcast %cst_23 : f32 to vector<8x128xf32>
    %36 = arith.mulf %35, %33 : vector<8x128xf32>
    %37 = math.exp %36 : vector<8x128xf32>
    %38 = arith.mulf %34, %37 : vector<8x128xf32>
    %39 = arith.addf %32, %38 : vector<8x128xf32>
    %c0_24 = arith.constant 0 : index
    %c0_25 = arith.constant 0 : index
    %40 = vector.load %arg9[%c0_24, %c0_25] : memref<128x128xf32, #tpu.memory_space<vmem>>, vector<128x128xf32>
    %cst_26 = arith.constant dense<0.000000e+00> : vector<8x128xf32>
    %41 = tpu.matmul %39, %40, %cst_26 {dimension_numbers = #tpu.dot_dimension_numbers<[1], [0], [0], [1], [0, 0, 1, 1], [], []>} : vector<8x128xf32>, vector<128x128xf32>, vector<8x128xf32> -> vector<8x128xf32>
    %c0_27 = arith.constant 0 : index
    %c0_28 = arith.constant 0 : index
    %42 = vector.load %arg10[%c0_27, %c0_28] : memref<1x128xf32, #tpu.memory_space<vmem>>, vector<1x128xf32>
    %43 = vector.broadcast %42 : vector<1x128xf32> to vector<8x128xf32>
    %44 = arith.addf %41, %43 : vector<8x128xf32>
    %cst_29 = arith.constant 5.000000e-01 : f32
    %45 = vector.broadcast %cst_29 : f32 to vector<8x128xf32>
    %46 = arith.mulf %45, %44 : vector<8x128xf32>
    %cst_30 = arith.constant 0.707106769 : f32
    %47 = vector.broadcast %cst_30 : f32 to vector<8x128xf32>
    %48 = arith.mulf %44, %47 : vector<8x128xf32>
    %49 = math.erf %48 : vector<8x128xf32>
    %cst_31 = arith.constant 1.000000e+00 : f32
    %50 = vector.broadcast %cst_31 : f32 to vector<8x128xf32>
    %51 = arith.addf %50, %49 : vector<8x128xf32>
    %52 = arith.mulf %46, %51 : vector<8x128xf32>
    %c0_32 = arith.constant 0 : index
    %c0_33 = arith.constant 0 : index
    %53 = vector.load %arg11[%c0_32, %c0_33] : memref<128x128xf32, #tpu.memory_space<vmem>>, vector<128x128xf32>
    %cst_34 = arith.constant dense<0.000000e+00> : vector<8x128xf32>
    %54 = tpu.matmul %52, %53, %cst_34 {dimension_numbers = #tpu.dot_dimension_numbers<[1], [0], [0], [1], [0, 0, 1, 1], [], []>} : vector<8x128xf32>, vector<128x128xf32>, vector<8x128xf32> -> vector<8x128xf32>
    %c0_35 = arith.constant 0 : index
    %c0_36 = arith.constant 0 : index
    %55 = vector.load %arg12[%c0_35, %c0_36] : memref<1x128xf32, #tpu.memory_space<vmem>>, vector<1x128xf32>
    %56 = vector.broadcast %55 : vector<1x128xf32> to vector<8x128xf32>
    %57 = arith.addf %54, %56 : vector<8x128xf32>
    %cst_37 = arith.constant 5.000000e-01 : f32
    %58 = vector.broadcast %cst_37 : f32 to vector<8x128xf32>
    %59 = arith.mulf %58, %57 : vector<8x128xf32>
    %cst_38 = arith.constant 0.707106769 : f32
    %60 = vector.broadcast %cst_38 : f32 to vector<8x128xf32>
    %61 = arith.mulf %57, %60 : vector<8x128xf32>
    %62 = math.erf %61 : vector<8x128xf32>
    %cst_39 = arith.constant 1.000000e+00 : f32
    %63 = vector.broadcast %cst_39 : f32 to vector<8x128xf32>
    %64 = arith.addf %63, %62 : vector<8x128xf32>
    %65 = arith.mulf %59, %64 : vector<8x128xf32>
    %c0_40 = arith.constant 0 : index
    %c0_41 = arith.constant 0 : index
    %66 = vector.load %arg13[%c0_40, %c0_41] : memref<128x128xf32, #tpu.memory_space<vmem>>, vector<128x128xf32>
    %cst_42 = arith.constant dense<0.000000e+00> : vector<8x128xf32>
    %67 = tpu.matmul %65, %66, %cst_42 {dimension_numbers = #tpu.dot_dimension_numbers<[1], [0], [0], [1], [0, 0, 1, 1], [], []>} : vector<8x128xf32>, vector<128x128xf32>, vector<8x128xf32> -> vector<8x128xf32>
    %c0_43 = arith.constant 0 : index
    %c0_44 = arith.constant 0 : index
    %68 = vector.load %arg14[%c0_43, %c0_44] : memref<1x128xf32, #tpu.memory_space<vmem>>, vector<1x128xf32>
    %69 = vector.broadcast %68 : vector<1x128xf32> to vector<8x128xf32>
    %70 = arith.addf %67, %69 : vector<8x128xf32>
    %c0_45 = arith.constant 0 : index
    %c0_46 = arith.constant 0 : index
    %71 = vector.load %arg15[%c0_45, %c0_46] : memref<8x128xf32, #tpu.memory_space<vmem>>, vector<8x128xf32>
    tpu.vector_store %arg15[%c0_45, %c0_46], %70 {strides = array<i32>} : memref<8x128xf32, #tpu.memory_space<vmem>>, vector<8x128xf32>,
    return
  }
  func.func @transform_0(%arg0: i32) -> (i32, i32) {
    %c0_i32 = arith.constant 0 : i32
    %c0_i32_0 = arith.constant 0 : i32
    return %arg0, %c0_i32 : i32, i32
  }
  func.func @transform_1(%arg0: i32) -> (i32, i32) {
    %c0_i32 = arith.constant 0 : i32
    %c0_i32_0 = arith.constant 0 : i32
    return %arg0, %c0_i32 : i32, i32
  }
  func.func @transform_2(%arg0: i32) -> (i32, i32) {
    %c0_i32 = arith.constant 0 : i32
    %c0_i32_0 = arith.constant 0 : i32
    %c0_i32_1 = arith.constant 0 : i32
    return %c0_i32, %c0_i32_0 : i32, i32
  }
  func.func @transform_3(%arg0: i32) -> (i32, i32) {
    %c0_i32 = arith.constant 0 : i32
    %c0_i32_0 = arith.constant 0 : i32
    %c0_i32_1 = arith.constant 0 : i32
    return %c0_i32, %c0_i32_0 : i32, i32
  }
  func.func @transform_4(%arg0: i32) -> (i32, i32) {
    %c0_i32 = arith.constant 0 : i32
    %c0_i32_0 = arith.constant 0 : i32
    %c0_i32_1 = arith.constant 0 : i32
    return %c0_i32, %c0_i32_0 : i32, i32
  }
  func.func @transform_5(%arg0: i32) -> (i32, i32) {
    %c0_i32 = arith.constant 0 : i32
    %c0_i32_0 = arith.constant 0 : i32
    %c0_i32_1 = arith.constant 0 : i32
    return %c0_i32, %c0_i32_0 : i32, i32
  }
  func.func @transform_6(%arg0: i32) -> (i32, i32) {
    %c0_i32 = arith.constant 0 : i32
    %c0_i32_0 = arith.constant 0 : i32
    %c0_i32_1 = arith.constant 0 : i32
    return %c0_i32, %c0_i32_0 : i32, i32
  }
  func.func @transform_7(%arg0: i32) -> (i32, i32) {
    %c0_i32 = arith.constant 0 : i32
    %c0_i32_0 = arith.constant 0 : i32
    %c0_i32_1 = arith.constant 0 : i32
    return %c0_i32, %c0_i32_0 : i32, i32
  }
  func.func @transform_8(%arg0: i32) -> (i32, i32) {
    %c0_i32 = arith.constant 0 : i32
    %c0_i32_0 = arith.constant 0 : i32
    %c0_i32_1 = arith.constant 0 : i32
    return %c0_i32, %c0_i32_0 : i32, i32
  }
  func.func @transform_9(%arg0: i32) -> (i32, i32) {
    %c0_i32 = arith.constant 0 : i32
    %c0_i32_0 = arith.constant 0 : i32
    %c0_i32_1 = arith.constant 0 : i32
    return %c0_i32, %c0_i32_0 : i32, i32
  }
  func.func @transform_10(%arg0: i32) -> (i32, i32) {
    %c0_i32 = arith.constant 0 : i32
    %c0_i32_0 = arith.constant 0 : i32
    %c0_i32_1 = arith.constant 0 : i32
    return %c0_i32, %c0_i32_0 : i32, i32
  }
  func.func @transform_11(%arg0: i32) -> (i32, i32) {
    %c0_i32 = arith.constant 0 : i32
    %c0_i32_0 = arith.constant 0 : i32
    %c0_i32_1 = arith.constant 0 : i32
    return %c0_i32, %c0_i32_0 : i32, i32
  }
  func.func @transform_12(%arg0: i32) -> (i32, i32) {
    %c0_i32 = arith.constant 0 : i32
    %c0_i32_0 = arith.constant 0 : i32
    %c0_i32_1 = arith.constant 0 : i32
    return %c0_i32, %c0_i32_0 : i32, i32
  }
  func.func @transform_13(%arg0: i32) -> (i32, i32) {
    %c0_i32 = arith.constant 0 : i32
    %c0_i32_0 = arith.constant 0 : i32
    %c0_i32_1 = arith.constant 0 : i32
    return %c0_i32, %c0_i32_0 : i32, i32
  }
  func.func @transform_14(%arg0: i32) -> (i32, i32) {
    %c0_i32 = arith.constant 0 : i32
    %c0_i32_0 = arith.constant 0 : i32
    return %arg0, %c0_i32 : i32, i32
  }
}

</mosaic_0001>

<bundles_post_ra>
// kernel: tpu_custom_call.1
= control target key start
LH: loop header
LB: loop body
LE: loop exit
PB: predicated region body
PF: predicated region fallthrough
CT: control target
= control target key end

     0   :  { %s2109_s0 = inlined_call_operand.hbm [shape: f32[16,128], index: 0, kind: input, shape index: {}]   ;;  %s2110_s1 = inlined_call_operand.hbm [shape: f32[16,128], index: 1, kind: input, shape index: {}]   ;;  %s2111_s2 = inlined_call_operand.hbm [shape: f32[128,128], index: 2, kind: input, shape index: {}]   ;;  %s2112_s3 = inlined_call_operand.vmem [shape: f32[1,128], index: 3, kind: input, shape index: {}]   ;;  %s2113_s4 = inlined_call_operand.hbm [shape: f32[128,128], index: 4, kind: input, shape index: {}]   ;;  %s2114_s5 = inlined_call_operand.vmem [shape: f32[1,128], index: 5, kind: input, shape index: {}]   ;;  %s2115_s6 = inlined_call_operand.hbm [shape: f32[128,256], index: 6, kind: input, shape index: {}]   ;;  %s2116_s7 = inlined_call_operand.vmem [shape: f32[1,256], index: 7, kind: input, shape index: {}]   ;;  %s2117_s8 = inlined_call_operand.hbm [shape: f32[128,128], index: 8, kind: input, shape index: {}]   ;;  %s2118_s9 = inlined_call_operand.vmem [shape: f32[1,128], index: 9, kind: input, shape index: {}]   ;;  %s2119_s10 = inlined_call_operand.hbm [shape: f32[128,128], index: 10, kind: input, shape index: {}]   ;;  %s2120_s11 = inlined_call_operand.vmem [shape: f32[1,128], index: 11, kind: input, shape index: {}]   ;;  %s2121_s12 = inlined_call_operand.hbm [shape: f32[128,128], index: 12, kind: input, shape index: {}]   ;;  %s2122_s13 = inlined_call_operand.vmem [shape: f32[1,128], index: 13, kind: input, shape index: {}]   ;;  %s2123_s14 = inlined_call_operand.hbm [shape: f32[16,128], index: 14, kind: output, shape index: {}]  }
   0x1   :  { %2134 = sst [smem:[#allocation29_spill]] %s2111_s2 }
   0x2   :  { %2135 = sst [smem:[#allocation30_spill]] %s2113_s4 }
   0x3   :  { %2136 = sst [smem:[#allocation31_spill]] %s2115_s6 }
   0x4   :  { %2137 = sst [smem:[#allocation32_spill]] %s2117_s8 }
   0x5   :  { %2138 = sst [smem:[#allocation33_spill]] %s2119_s10 }
   0x6   :  { %2139 = sst [smem:[#allocation34_spill]] %s2121_s12 }
   0x7   :  { %2140 = sst [smem:[#allocation35_spill]] %s2122_s13 }
   0x8   :  { %2141 = sst [smem:[#allocation36_spill]] %s2123_s14 }
   0x9   :  { %19 = vsyncpa [#allocation3], 0 }
   0xa   :  { %21 = vsyncpa [#allocation3 + $0x1], 0 }
   0xb   :  { %22 = vsyncpa [#allocation6], 0 }
   0xc   :  { %24 = vsyncpa [#allocation6 + $0x1], 0 }
   0xd   :  { %25 = vsyncpa [#allocation9], 0 }
   0xe   :  { %26 = vsyncpa [#allocation12], 0 }
   0xf   :  { %27 = vsyncpa [#allocation15], 0 }
  0x10   :  { %28 = vsyncpa [#allocation4], 0 }
  0x11   :  { %30 = vsyncpa [#allocation4 + $0x1], 0  ;;  %s1826_s29 = smov 0   ;;  %s1828_s30 = smov 0  }
  0x12   :  { %s1830_s15 = smov 0   ;;  %s1832_s16 = smov 0  }
  0x13 LB: > { %2142 = sst [smem:[#allocation24_spill]] %s1735_s15  ;;  %s1850_s20 = sadd.s32 4294967295, %s1739_s16   ;;  %s1739_s16 = sphi %s1832_s16, %s2167_s16   ;;  %s1735_s15 = sphi %s1830_s15, %s2169_s15   ;;  %s1731_s30 = sphi %s1828_s30, %s2171_s30   ;;  %s1727_s29 = sphi %s1826_s29, %s2170_s29  }
  0x14   : > { %2143 = sst [smem:[#allocation25_spill]] %s1739_s16  ;;  %p1252_p0 = scmp.ge.s32.totalorder %s1739_s16, 1 }
  0x15   : > { %s2144_s2 = sld [smem:[#allocation29_spill]]  ;;  %p57_p1 = scmp.eq.s32.totalorder %s1850_s20, 0 }
  0x16   : > { %p371_p2 = scmp.lt.s32.totalorder %s1739_s16, 3  ;;  %s1741_s22 = smov [#allocation7]  }
  0x17   : > { %s384_s23 = sshll.u32 %s1741_s22, 4  ;;  %s2146_s4 = sld [smem:[#allocation30_spill]]  ;;  %s385_s23 = int_to_ptr.vmem [resolvable:$true] %s384_s23 }
  0x18   : > { %p1855_p3 = pnand %p1252_p0, %p371_p2  ;;  %s2148_s8 = sld [smem:[#allocation32_spill]] }
  0x19   : > { %s1742_s22 = smov [#allocation8]   ;;  %s2125_s13 = smov 128  }
  0x1a   : > { %p1312_p4 = pneg %p1855_p3  ;;  %s2127_s14 = smov 8  }
  0x1b   : > { %s382_s19 = sshll.u32 %s2144_s2, 4  ;;  %s401_s2 = sshll.u32 %s1742_s22, 4  ;;  %s383_s19 = int_to_ptr.hbm [resolvable:$true] %s382_s19  ;;  %s402_s2 = int_to_ptr.vmem [resolvable:$true] %s401_s2 }
  0x1c   : > { %p1867_p6 = pnand %p1312_p4, %p57_p1  ;;  %s2149_s6 = sld [smem:[#allocation31_spill]] }
  0x1d   : > { %s399_s26 = sshll.u32 %s2146_s4, 4  ;;  %s1745_s17 = smov [#allocation11]   ;;  %s400_s26 = int_to_ptr.hbm [resolvable:$true] %s399_s26 }
  0x1e   : > { %s433_s18 = sshll.u32 %s2148_s8, 4  ;;  %s435_s22 = sshll.u32 %s1745_s17, 4  ;;  %s434_s18 = int_to_ptr.hbm [resolvable:$true] %s433_s18  ;;  %s436_s22 = int_to_ptr.vmem [resolvable:$true] %s435_s22 }
  0x1f   : > { %1315 = dma.hbm_to_vmem [thread:$0]  (!%p1867_p6), %s383_s19, 2048, %s385_s23, [#allocation6], %s2125_s13, %s2125_s13, %s2127_s14  }
  0x20   : > { %1318 = dma.hbm_to_vmem [thread:$0]  (!%p1867_p6), %s400_s26, 2048, %s402_s2, [#allocation9], %s2125_s13, %s2125_s13, %s2127_s14  }
  0x21   : > { %1324 = dma.hbm_to_vmem [thread:$0]  (!%p1867_p6), %s434_s18, 2048, %s436_s22, [#allocation12], %s2125_s13, %s2125_s13, %s2127_s14  }
  0x22   : > { %s416_s28 = sshll.u32 %s2149_s6, 4  ;;  %s1746_s19 = smov [#allocation10]   ;;  %s417_s28 = int_to_ptr.hbm [resolvable:$true] %s416_s28 }
  0x23   : > { %s418_s23 = sshll.u32 %s1746_s19, 4  ;;  %s1747_s2 = smov 256   ;;  %s419_s23 = int_to_ptr.vmem [resolvable:$true] %s418_s23 }
  0x24   : > { %s1748_s26 = smov 16   ;;  %s2150_s10 = sld [smem:[#allocation33_spill]] }
  0x25   : > { %1321 = dma.hbm_to_vmem [thread:$0]  (!%p1867_p6), %s417_s28, 4096, %s419_s23, [#allocation9], %s1747_s2, %s1747_s2, %s1748_s26  }
  0x26   : > { %s1749_s18 = smov [#allocation13]   ;;  %s2151_s12 = sld [smem:[#allocation34_spill]] }
  0x27   : > { %s452_s22 = sshll.u32 %s1749_s18, 4  ;;  %s2152_s28 = smov 8   ;;  %s453_s22 = int_to_ptr.vmem [resolvable:$true] %s452_s22 }
  0x28   : > { %s2153_s23 = smov 128   ;;  %s1750_s2 = smov [#allocation14]  }
  0x29   : > { %s469_s26 = sshll.u32 %s1750_s2, 4  ;;  %s1251_s13 = sadd.s32 4294967294, %s1739_s16   ;;  %s470_s26 = int_to_ptr.vmem [resolvable:$true] %s469_s26 }
  0x2a   : > { %s450_s17 = sshll.u32 %s2150_s10, 4  ;;  %s1912_s24 = sadd.s32 1, %s1739_s16   ;;  %s451_s17 = int_to_ptr.hbm [resolvable:$true] %s450_s17 }
  0x2b   : > { %1327 = dma.hbm_to_vmem [thread:$0]  (!%p1867_p6), %s451_s17, 2048, %s453_s22, [#allocation12], %s2153_s23, %s2153_s23, %s2152_s28  }
  0x2c   : > { %s467_s14 = sshll.u32 %s2151_s12, 4  ;;  %2154 = sst [smem:[#allocation26_spill]] %s1912_s24  ;;  %s468_s14 = int_to_ptr.hbm [resolvable:$true] %s467_s14 }
  0x2d   : > { %1330 = dma.hbm_to_vmem [thread:$0]  (!%p1867_p6), %s468_s14, 2048, %s470_s26, [#allocation15], %s2153_s23, %s2153_s23, %s2152_s28  }
  0x2e   : > { %s40_s25 = ssub.s32 %s1739_s16, %s1912_s24  ;;  %s43_s17 = sadd.s32 1, %s1735_s15 }
  0x2f   : > { %p41_p7 = scmp.eq.s32.totalorder %s40_s25, 0  ;;  %p50_p8 = scmp.ne.s32.totalorder %s1735_s15, %s1731_s30 }
  0x30   : > { %p51_p9 = scmp.eq.s32.totalorder %s1739_s16, 0  ;;  %p56_p10 = scmp.ne.s32.totalorder %s1731_s30, %s1727_s29 }
  0x31   : > { %s1923_s18 = scalar_select %p41_p7, %s1735_s15, %s43_s17  }
  0x32   : > { %p1925_p11 = por %p51_p9, %p50_p8  ;;  %p1931_p12 = por %p57_p1, %p56_p10 }
  0x33   : > { %2155 = sst [smem:[#allocation27_spill]] %s1923_s18  ;;  %p358_p13 = scmp.eq.s32.totalorder %s1850_s20, 1 }
  0x34   : > { %p364_p0 = scmp.eq.s32.totalorder %s1251_s13, 1  ;;  %p1348_p2 = scmp.lt.s32.totalorder %s1739_s16, 2 }
  0x35   : > { %s486_s22 = sand.u32 1, %s1735_s15   ;;  %p1938_p4 = por %p358_p13, %p50_p8 }
  0x36   : > { %p1942_p6 = por %p364_p0, %p56_p10  ;;  %s1946_s23 = sshll.u32 %s486_s22, 3 }
  0x37   : > { %s1261_s2 = sshll.u32 %s1739_s16, 3  ;;  %s490_s4 = scalar_lea.vmem [#allocation2], %s1946_s23 }
  0x38   : > { %s2159_s28 = scalar_select %p1942_p6, 1, 0 }
  0x39   : > { %s494_s17 = scalar_lea.hbm %s2109_s0, %s1261_s2  ;;  %s498_s13 = sshll.u32 %s490_s4, 4  ;;  %s499_s13 = int_to_ptr.vmem [resolvable:$true] %s498_s13 }
  0x3a   : > { %2160 = sst [smem:[#allocation28_spill]] %s2159_s28  ;;  %s496_s6 = sshll.u32 %s494_s17, 4  ;;  %s497_s6 = int_to_ptr.hbm [resolvable:$true] %s496_s6 }
  0x3b   : > { %p1955_p7 = pnand %p1348_p2, %p1925_p11  ;;  %s513_s18 = scalar_lea.hbm %s2110_s1, %s1261_s2 }
  0x3c   : > { %s505_s15 = sand.u32 1, %s1739_s16   ;;  %s487_s24 = scalar_lea.sflag [#allocation3], %s486_s22 }
  0x3d   : > { %s1593_s26 = sshra.s32 %s497_s6, 4  ;;  %p1597_p9 = pneg %p1955_p7  ;;  %s1594_s26 = int_to_ptr.hbm [resolvable:$true] %s1593_s26 }
  0x3e   : > { %s1595_s25 = scalar_lea.hbm %s1594_s26, 8  ;;  %s1600_s17 = scalar_lea.hbm %s2109_s0, 16 }
  0x3f   : > { %p1596_p8 = scmp.ne.s32.totalorder %s1594_s26, %s1595_s25  ;;  %p1601_p13 = scmp.lt.s32.totalorder %s1594_s26, %s2109_s0 }
  0x40   : > { %p1602_p0 = scmp.lt.s32.totalorder %s1600_s17, %s1595_s25 }
  0x41   : > { %p1598_p10 = pnand %p1597_p9, %p1596_p8 }
  0x42   : > { %p1603_p2 = por %p1602_p0, %p1601_p13 }
  0x43   : > { %p1599_p11 = pneg %p1598_p10 }
  0x45   : > { %p1604_p5 = pnand %p1603_p2, %p1599_p11 }
  0x47   : > { %1607 = shalt.err (!%p1604_p5)
}
  0x48   : > { %1334 = dma.hbm_to_vmem [thread:$0]  (!%p1955_p7), %s497_s6, 128, %s499_s13, %s487_s24  }
  0x49   : > { %s515_s22 = sshll.u32 %s513_s18, 4  ;;  %s509_s2 = scalar_lea.vmem [#allocation5], %s1946_s23  ;;  %s516_s22 = int_to_ptr.hbm [resolvable:$true] %s515_s22 }
  0x4a   : > { %s517_s16 = sshll.u32 %s509_s2, 4  ;;  %s506_s4 = scalar_lea.sflag [#allocation6], %s505_s15  ;;  %s518_s16 = int_to_ptr.vmem [resolvable:$true] %s517_s16 }
  0x4b   : > { %s1623_s27 = sshra.s32 %s516_s22, 4  ;;  %s1630_s17 = scalar_lea.hbm %s2110_s1, 16  ;;  %s1624_s27 = int_to_ptr.hbm [resolvable:$true] %s1623_s27 }
  0x4c   : > { %s1625_s28 = scalar_lea.hbm %s1624_s27, 8  ;;  %p1631_p5 = scmp.lt.s32.totalorder %s1624_s27, %s2110_s1 }
  0x4d   : > { %p1626_p8 = scmp.ne.s32.totalorder %s1624_s27, %s1625_s28  ;;  %p1632_p13 = scmp.lt.s32.totalorder %s1630_s17, %s1625_s28 }
  0x4f   : > { %p1628_p10 = pnand %p1626_p8, %p1597_p9  ;;  %p1633_p0 = por %p1632_p13, %p1631_p5 }
  0x51   : > { %p1629_p11 = pneg %p1628_p10 }
  0x53   : > { %p1634_p2 = pnand %p1633_p0, %p1629_p11 }
  0x55   : > { %1637 = shalt.err (!%p1634_p2)
}
  0x56   : > { %1337 = dma.hbm_to_vmem [thread:$0]  (!%p1955_p7), %s516_s22, 128, %s518_s16, %s506_s4  }
  0x57   : > { %526 = sbr.rel (%p1855_p3) target bundleno = 1138 (0x472), region = 76  ;;  %s1991_s15 = sand.u32 (!%p1855_p3), 1, %s1731_s30  }
  0x58   : > { %s1994_s24 = sshll.u32 (!%p1855_p3), %s1991_s15, 3  ;;  %s529_s18 = scalar_lea.sflag (!%p1855_p3), [#allocation3], %s1991_s15 }
  0x59   : > { %s532_s28 = scalar_lea.vmem (!%p1855_p3), [#allocation2], %s1994_s24 }
  0x5c   : > { %1698 = dma.done.wait (%p1931_p12), %s529_s18, 128  }
  0x5d   : > { %1700 = vsyncadd (%p1931_p12), %s529_s18, 4294967168  ;;  %s538_s8 = sand.u32 1, %s1850_s20   ;;  %s542_s21 = scalar_lea.vmem [#allocation5], %s1994_s24 }
  0x5e   : > { %s539_s16 = scalar_lea.sflag [#allocation6], %s538_s8 }
  0x5f   : > { %1702 = dma.done.wait (%p1931_p12), %s539_s16, 128  }
  0x60   : > { %1704 = vsyncadd (%p1931_p12), %s539_s16, 4294967168 }
  0x61   : > { %1706 = dma.done.wait (%p57_p1), [#allocation6], 2048  }
  0x62   : > { %1708 = vsyncadd (%p57_p1), [#allocation6], 4294965248 }
  0x63   : > { %1710 = dma.done.wait (%p57_p1), [#allocation9], 6144  }
  0x64   : > { %1712 = vsyncadd (%p57_p1), [#allocation9], 4294961152 }
  0x65   : > { %1714 = dma.done.wait (%p57_p1), [#allocation12], 4096  }
  0x66   : > { %1716 = vsyncadd (%p57_p1), [#allocation12], 4294963200 }
  0x67   : > { %1718 = dma.done.wait (%p57_p1), [#allocation15], 2048  }
  0x68   : > { %1720 = vsyncadd (%p57_p1), [#allocation15], 4294965248  ;;  %v639_v0 = vld [vmem:[#allocation7 + $0x78] sm:$0xff]  ;;  %v638_v1 = vld [vmem:[#allocation7 + $0x70] sm:$0xff]  ;;  %s1279_s17 = sshll.u32 %s1850_s20, 3  ;;  %s2162_s18 = sld [smem:[#allocation36_spill]] }
  0x69   : > { %644 = vmatpush.msra.mxu0 %v639_v0  ;;  %v637_v2 = vld [vmem:[#allocation7 + $0x68] sm:$0xff]  ;;  %v636_v3 = vld [vmem:[#allocation7 + $0x60] sm:$0xff]  ;;  %v635_v4 = vld [vmem:[#allocation7 + $0x58] sm:$0xff]  ;;  %s622_s14 = scalar_lea.vmem [#allocation16], %s1994_s24  ;;  %s1086_s12 = scalar_lea.sflag [#allocation4], %s1991_s15 }
  0x6a   : > { %v634_v5 = vld [vmem:[#allocation7 + $0x50] sm:$0xff]  ;;  %v633_v6 = vld [vmem:[#allocation7 + $0x48] sm:$0xff]  ;;  %v632_v7 = vld [vmem:[#allocation7 + $0x40] sm:$0xff]  ;;  %s1098_s23 = sshll.u32 %s622_s14, 4  ;;  %s1099_s23 = int_to_ptr.vmem [resolvable:$true] %s1098_s23 }
  0x6b   : > { %645 = vmatpush.msra.mxu0 %v638_v1  ;;  %v631_v8 = vld [vmem:[#allocation7 + $0x38] sm:$0xff]  ;;  %v630_v9 = vld [vmem:[#allocation7 + $0x30] sm:$0xff]  ;;  %v629_v10 = vld [vmem:[#allocation7 + $0x28] sm:$0xff] }
  0x6c   : > { %v628_v11 = vld [vmem:[#allocation7 + $0x20] sm:$0xff]  ;;  %v627_v12 = vld [vmem:[#allocation7 + $0x18] sm:$0xff]  ;;  %v626_v13 = vld [vmem:[#allocation7 + $0x10] sm:$0xff] }
  0x6d   : > { %646 = vmatpush.msra.mxu0 %v637_v2  ;;  %v625_v14 = vld [vmem:[#allocation7 + $0x8] sm:$0xff]  ;;  %v624_v15 = vld [vmem:[#allocation7] sm:$0xff]  ;;  %v723_v17 = vld [vmem:[#allocation8 + $0x78] sm:$0xff] }
  0x6e   : > { %v623_v16 = vld [vmem:[%s532_s28] sm:$0xff]  ;;  %728 = vmatpush.msra.mxu1 %v723_v17  ;;  %v722_v18 = vld [vmem:[#allocation8 + $0x70] sm:$0xff]  ;;  %v719_v22 = vld [vmem:[#allocation8 + $0x58] sm:$0xff]  ;;  %s1096_s28 = scalar_lea.hbm %s2162_s18, %s1279_s17  ;;  %s1673_s27 = scalar_lea.hbm %s2162_s18, 16 }
  0x6f   : > { %647 = vmatpush.msra.mxu0 %v636_v3  ;;  %v721_v19 = vld [vmem:[#allocation8 + $0x68] sm:$0xff]  ;;  %v720_v20 = vld [vmem:[#allocation8 + $0x60] sm:$0xff]  ;;  %v718_v23 = vld [vmem:[#allocation8 + $0x50] sm:$0xff]  ;;  %s1100_s13 = sshll.u32 %s1096_s28, 4  ;;  %s1101_s13 = int_to_ptr.hbm [resolvable:$true] %s1100_s13 }
  0x70   : > { %729 = vmatpush.msra.mxu1 %v722_v18  ;;  %v1398_v21 = vld [vmem:[%s2112_s3] ss:$0 sm:$0xff]  ;;  %v717_v25 = vld [vmem:[#allocation8 + $0x48] sm:$0xff]  ;;  %v715_v29 = vld [vmem:[#allocation8 + $0x38] sm:$0xff]  ;;  %s1667_s22 = sshra.s32 %s1101_s13, 4  ;;  %s1668_s22 = int_to_ptr.hbm [resolvable:$true] %s1667_s22 }
  0x71   : > { %648 = vmatpush.msra.mxu0 %v635_v4  ;;  %v716_v27 = vld [vmem:[#allocation8 + $0x40] sm:$0xff]  ;;  %v714_v31 = vld [vmem:[#allocation8 + $0x30] sm:$0xff]  ;;  %v713_v33 = vld [vmem:[#allocation8 + $0x28] sm:$0xff]  ;;  %s1669_s20 = scalar_lea.hbm %s1668_s22, 8  ;;  %p1674_p7 = scmp.lt.s32.totalorder %s1668_s22, %s2162_s18 }
  0x72   : > { %730 = vmatpush.msra.mxu1 %v721_v19  ;;  %v712_v36 = vld [vmem:[#allocation8 + $0x20] sm:$0xff]  ;;  %v711_v39 = vld [vmem:[#allocation8 + $0x18] sm:$0xff]  ;;  %v710_v42 = vld [vmem:[#allocation8 + $0x10] sm:$0xff]  ;;  %p1670_p1 = scmp.ne.s32.totalorder %s1668_s22, %s1669_s20  ;;  %p1675_p9 = scmp.lt.s32.totalorder %s1673_s27, %s1669_s20 }
  0x73   : > { %649 = vmatpush.msra.mxu0 %v634_v5  ;;  %v709_v45 = vld [vmem:[#allocation8 + $0x8] sm:$0xff]  ;;  %v708_v47 = vld [vmem:[#allocation8] sm:$0xff] }
  0x74   : > { %731 = vmatpush.msra.mxu1 %v720_v20  ;;  %v1399_v17 = vld [vmem:[%s2114_s5] ss:$0 sm:$0xff]  ;;  %v817_v19 = vld [vmem:[#allocation10 + $0xc8] sm:$0xff]  ;;  %v814_v20 = vld [vmem:[#allocation10 + $0xb0] sm:$0xff]  ;;  %p1671_p3 = pnand %p1670_p1, %p1938_p4  ;;  %p1676_p8 = por %p1675_p9, %p1674_p7 }
  0x75   : > { %650 = vmatpush.msra.mxu0 %v633_v6  ;;  %v816_v18 = vld [vmem:[#allocation10 + $0xc0] sm:$0xff] }
  0x76   : > { %732 = vmatpush.msra.mxu1 %v719_v22  ;;  %v812_v22 = vld [vmem:[#allocation10 + $0xa0] sm:$0xff]  ;;  %p1672_p12 = pneg %p1671_p3 }
  0x77   : > { %651 = vmatpush.msra.mxu0 %v632_v7 }
  0x78   : > { %733 = vmatpush.msra.mxu1 %v718_v23  ;;  %v813_v23 = vld [vmem:[#allocation10 + $0xa8] sm:$0xff]  ;;  %p1677_p10 = pnand %p1676_p8, %p1672_p12 }
  0x79   : > { %652 = vmatpush.msra.mxu0 %v631_v8 }
  0x7a   : > { %734 = vmatpush.msra.mxu1 %v717_v25 }
  0x7b   : > { %653 = vmatpush.msra.mxu0 %v630_v9 }
  0x7c   : > { %735 = vmatpush.msra.mxu1 %v716_v27  ;;  %v811_v27 = vld [vmem:[#allocation10 + $0x98] sm:$0xff] }
  0x7d   : > { %654 = vmatpush.msra.mxu0 %v629_v10 }
  0x7e   : > { %736 = vmatpush.msra.mxu1 %v715_v29  ;;  %v808_v29 = vld [vmem:[#allocation10 + $0x80] sm:$0xff] }
  0x7f   : > { %655 = vmatpush.msra.mxu0 %v628_v11  ;;  %v822_v11 = vld [vmem:[#allocation10 + $0xf0] sm:$0xff] }
  0x80   : > { %737 = vmatpush.msra.mxu1 %v714_v31  ;;  %830 = vmatpush.msra.mxu2 %v822_v11 }
  0x81   : > { %656 = vmatpush.msra.mxu0 %v627_v12  ;;  %v823_v12 = vld [vmem:[#allocation10 + $0xf8] sm:$0xff] }
  0x82   : > { %738 = vmatpush.msra.mxu1 %v713_v33  ;;  %850 = vmatpush.msra.mxu3 %v823_v12  ;;  %v807_v33 = vld [vmem:[#allocation10 + $0x78] sm:$0xff] }
  0x83   : > { %657 = vmatpush.msra.mxu0 %v626_v13  ;;  %v820_v13 = vld [vmem:[#allocation10 + $0xe0] sm:$0xff] }
  0x84   : > { %739 = vmatpush.msra.mxu1 %v712_v36  ;;  %831 = vmatpush.msra.mxu2 %v820_v13  ;;  %v805_v36 = vld [vmem:[#allocation10 + $0x68] sm:$0xff] }
  0x85   : > { %658 = vmatpush.msra.mxu0 %v625_v14  ;;  %v821_v14 = vld [vmem:[#allocation10 + $0xe8] sm:$0xff] }
  0x86   : > { %740 = vmatpush.msra.mxu1 %v711_v39  ;;  %851 = vmatpush.msra.mxu3 %v821_v14  ;;  %v803_v39 = vld [vmem:[#allocation10 + $0x58] sm:$0xff] }
  0x87   : > { %659 = vmatpush.msra.mxu0 %v624_v15  ;;  %v818_v15 = vld [vmem:[#allocation10 + $0xd0] sm:$0xff] }
  0x88   : > { %660 = vmatmul.f32.vlgmr.msra.gmra.mxu0 %v623_v16  ;;  %741 = vmatpush.msra.mxu1 %v710_v42  ;;  %v819_v16 = vld [vmem:[#allocation10 + $0xd8] sm:$0xff]  ;;  %v800_v42 = vld [vmem:[#allocation10 + $0x40] sm:$0xff] }
  0x89   : > { %832 = vmatpush.msra.mxu2 %v818_v15  ;;  %852 = vmatpush.msra.mxu3 %v819_v16 }
  0x8a   : > { %742 = vmatpush.msra.mxu1 %v709_v45 }
  0x8b   : > { %833 = vmatpush.msra.mxu2 %v816_v18  ;;  %853 = vmatpush.msra.mxu3 %v817_v19 }
  0x8c   : > { %743 = vmatpush.msra.mxu1 %v708_v47  ;;  %v799_v47 = vld [vmem:[#allocation10 + $0x38] sm:$0xff] }
  0x8d   : > { %834 = vmatpush.msra.mxu2 %v814_v20 }
  0x8f   : > { %835 = vmatpush.msra.mxu2 %v812_v22 }
 0x105   : > { %v661_v24 = vpop.f32.mrf.mxu0 }
 0x106   : > { %v662_v26 = vadd.f32 %v1398_v21, %v661_v24  ;;  %v815_v21 = vld [vmem:[#allocation10 + $0xb8] sm:$0xff] }
 0x107   : > { %854 = vmatpush.msra.mxu3 %v815_v21 }
 0x108   : > { %v665_v28 = vmul.f32 0.70710677, %v662_v26  ;;  %v664_v8 = vmul.f32 0.5, %v662_v26  ;;  %v810_v26 = vld [vmem:[#allocation10 + $0x90] sm:$0xff] }
 0x109   : > { %855 = vmatpush.msra.mxu3 %v813_v23  ;;  %836 = vmatpush.msra.mxu2 %v810_v26 }
 0x10a   : > { %v666_v30 = vmul.f32 %v665_v28, %v665_v28 }
 0x10b   : > { %856 = vmatpush.msra.mxu3 %v811_v27  ;;  %837 = vmatpush.msra.mxu2 %v808_v29 }
 0x10c   : > { %v667_v32 = vmin.f32 %v666_v30, 16.0  ;;  %v809_v30 = vld [vmem:[#allocation10 + $0x88] sm:$0xff] }
 0x10d   : > { %857 = vmatpush.msra.mxu3 %v809_v30  ;;  %v884_v30 = vld [vmem:[#allocation11 + $0x40] sm:$0xff] }
 0x10e   : > { %v668_v34 = vmul.f32 2.1237322e-06, %v667_v32  ;;  %v679_v35 = vmul.f32 3.8918573e-05, %v667_v32 }
 0x10f   : > { %858 = vmatpush.msra.mxu3 %v807_v33  ;;  %v881_v33 = vld [vmem:[#allocation11 + $0x28] sm:$0xff] }
 0x110   : > { %v669_v37 = vadd.f32 0.00028619796, %v668_v34  ;;  %v680_v38 = vadd.f32 0.001143296, %v679_v35  ;;  %v804_v35 = vld [vmem:[#allocation10 + $0x60] sm:$0xff] }
 0x111   : > { %859 = vmatpush.msra.mxu3 %v805_v36  ;;  %v877_v36 = vld [vmem:[#allocation11 + $0x8] sm:$0xff] }
 0x112   : > { %v670_v40 = vmul.f32 %v669_v37, %v667_v32  ;;  %v681_v41 = vmul.f32 %v680_v38, %v667_v32  ;;  %v802_v38 = vld [vmem:[#allocation10 + $0x50] sm:$0xff] }
 0x113   : > { %860 = vmatpush.msra.mxu3 %v803_v39 }
 0x114   : > { %v682_v43 = vadd.f32 0.014752088, %v681_v41  ;;  %v671_v44 = vadd.f32 0.0036580483, %v670_v40 }
 0x116   : > { %v683_v46 = vmul.f32 %v682_v43, %v667_v32  ;;  %v672_v49 = vmul.f32 %v671_v44, %v667_v32  ;;  %v801_v43 = vld [vmem:[#allocation10 + $0x48] sm:$0xff] }
 0x117   : > { %861 = vmatpush.msra.mxu3 %v801_v43 }
 0x118   : > { %v684_v48 = vadd.f32 0.112945676, %v683_v46  ;;  %v673_v52 = vadd.f32 0.05243302, %v672_v49  ;;  %v798_v46 = vld [vmem:[#allocation10 + $0x30] sm:$0xff]  ;;  %v796_v49 = vld [vmem:[#allocation10 + $0x20] sm:$0xff] }
 0x119   : > { %862 = vmatpush.msra.mxu3 %v799_v47 }
 0x11a   : > { %v685_v50 = vmul.f32 %v684_v48, %v667_v32  ;;  %v674_v55 = vmul.f32 %v673_v52, %v667_v32 }
 0x11c   : > { %v686_v51 = vadd.f32 0.4994258, %v685_v50  ;;  %v675_v56 = vadd.f32 0.18741608, %v674_v55  ;;  %v797_v50 = vld [vmem:[#allocation10 + $0x28] sm:$0xff] }
 0x11d   : > { %863 = vmatpush.msra.mxu3 %v797_v50  ;;  %v975_v50 = vld [vmem:[#allocation13 + $0x78] sm:$0xff] }
 0x11e   : > { %v687_v53 = vmul.f32 %v686_v51, %v667_v32  ;;  %v676_v58 = vmul.f32 %v675_v56, %v667_v32  ;;  %v806_v32 = vld [vmem:[#allocation10 + $0x70] sm:$0xff]  ;;  %v792_v56 = vld [vmem:[#allocation10] sm:$0xff]  ;;  %980 = vmatpush.msrb.mxu1 %v975_v50 }
 0x11f   : > { %838 = vmatpush.msra.mxu2 %v806_v32  ;;  %v882_v32 = vld [vmem:[#allocation11 + $0x30] sm:$0xff] }
 0x120   : > { %v688_v54 = vadd.f32 1.0, %v687_v53  ;;  %v677_v62 = vadd.f32 1.1283791, %v676_v58  ;;  %v794_v53 = vld [vmem:[#allocation10 + $0x10] sm:$0xff] }
 0x121   : > { %839 = vmatpush.msra.mxu2 %v804_v35  ;;  %v878_v35 = vld [vmem:[#allocation11 + $0x10] sm:$0xff] }
 0x122   : > { %1403 = vrcp.f32 %v688_v54  ;;  %v700_v61 = vand.u32 2147483648, %v688_v54  ;;  %v698_v0 = vand.u32 2147483647, %v688_v54  ;;  %vm694_vm1 = vweird.f32 %v688_v54 }
 0x123   : > { %v678_v3 = vmul.f32 %v677_v62, %v665_v28  ;;  %840 = vmatpush.msra.mxu2 %v802_v38  ;;  %v890_v62 = vld [vmem:[#allocation11 + $0x70] sm:$0xff] }
 0x124   : > { %v701_v2 = vor.u32 1.1754944e-38, %v700_v61  ;;  %vm699_vm3 = vcmp.eq.f32.partialorder %v698_v0, 8.507059e+37  ;;  %v891_v61 = vld [vmem:[#allocation11 + $0x78] sm:$0xff] }
 0x125   : > { %841 = vmatpush.msra.mxu2 %v800_v42  ;;  %896 = vmatpush.msrb.mxu0 %v891_v61 }
 0x127   : > { %842 = vmatpush.msra.mxu2 %v798_v46  ;;  %897 = vmatpush.msrb.mxu0 %v890_v62  ;;  %v968_v62 = vld [vmem:[#allocation13 + $0x40] sm:$0xff] }
 0x128   : > { %v1404_v57 = vpop.eup %1403 }
 0x129   : > { %v690_v59 = vmul.f32 %v1404_v57, %v688_v54  ;;  %vm695_vm0 = vweird.f32 %v1404_v57  ;;  %v795_v54 = vld [vmem:[#allocation10 + $0x18] sm:$0xff]  ;;  %843 = vmatpush.msra.mxu2 %v796_v49 }
 0x12a   : > { %vm696_vm2 = vmor %vm694_vm1, %vm695_vm0  ;;  %864 = vmatpush.msra.mxu3 %v795_v54  ;;  %v972_v54 = vld [vmem:[#allocation13 + $0x60] sm:$0xff] }
 0x12b   : > { %v691_v60 = vsub.f32 1.0, %v690_v59  ;;  %844 = vmatpush.msra.mxu2 %v794_v53  ;;  %v1400_v53 = vld [vmem:[%s2118_s9] ss:$0 sm:$0xff] }
 0x12d   : > { %v692_v63 = vmul.f32 %v1404_v57, %v691_v60  ;;  %845 = vmatpush.msra.mxu2 %v792_v56 }
 0x12f   : > { %v693_v1 = vadd.f32 %v1404_v57, %v692_v63 }
 0x131   : > { %v697_v4 = vsel %vm696_vm2, %v1404_v57, %v693_v1  ;;  %v793_v57 = vld [vmem:[#allocation10 + $0x8] sm:$0xff] }
 0x132   : > { %v702_v5 = vsel %vm699_vm3, %v701_v2, %v697_v4  ;;  %865 = vmatpush.msra.mxu3 %v793_v57  ;;  %v889_v1 = vld [vmem:[#allocation11 + $0x68] sm:$0xff] }
 0x133   : > { %v703_v6 = vmul.f32 %v702_v5, %v678_v3  ;;  %v888_v3 = vld [vmem:[#allocation11 + $0x60] sm:$0xff]  ;;  %898 = vmatpush.msrb.mxu0 %v889_v1 }
 0x135   : > { %v1274_v7 = vclamps-f32 %v703_v6, 1.0  ;;  %v887_v6 = vld [vmem:[#allocation11 + $0x58] sm:$0xff]  ;;  %899 = vmatpush.msrb.mxu0 %v888_v3  ;;  %v966_v3 = vld [vmem:[#allocation13 + $0x30] sm:$0xff] }
 0x137   : > { %v706_v9 = vadd.f32 1.0, %v1274_v7  ;;  %v886_v7 = vld [vmem:[#allocation11 + $0x50] sm:$0xff]  ;;  %900 = vmatpush.msrb.mxu0 %v887_v6  ;;  %v965_v6 = vld [vmem:[#allocation13 + $0x28] sm:$0xff] }
 0x139   : > { %v707_v10 = vmul.f32 %v706_v9, %v664_v8  ;;  %v885_v9 = vld [vmem:[#allocation11 + $0x48] sm:$0xff]  ;;  %901 = vmatpush.msrb.mxu0 %v886_v7 }
 0x13b   : > { %744 = vmatmul.f32.vlgmr.msra.gmra.mxu1 %v707_v10  ;;  %902 = vmatpush.msrb.mxu0 %v885_v9  ;;  %v964_v9 = vld [vmem:[#allocation13 + $0x20] sm:$0xff] }
 0x13d   : > { %903 = vmatpush.msrb.mxu0 %v884_v30 }
 0x1b8   : > { %v745_v24 = vpop.f32.mrf.mxu1 }
 0x1b9   : > { %v2032_v25 = vadd.f32 %v1399_v17, %v745_v24 }
 0x1bb   : > { %v2035_v28 = vmul.f32 0.70710677, %v2032_v25  ;;  %v748_v26 = vmul.f32 0.5, %v2032_v25  ;;  %v876_v25 = vld [vmem:[#allocation11] sm:$0xff] }
 0x1bd   : > { %v750_v31 = vmul.f32 %v2035_v28, %v2035_v28 }
 0x1bf   : > { %v2039_v34 = vmin.f32 %v750_v31, 16.0  ;;  %v883_v31 = vld [vmem:[#allocation11 + $0x38] sm:$0xff] }
 0x1c0   : > { %904 = vmatpush.msrb.mxu0 %v883_v31 }
 0x1c1   : > { %v752_v37 = vmul.f32 2.1237322e-06, %v2039_v34  ;;  %v763_v40 = vmul.f32 3.8918573e-05, %v2039_v34 }
 0x1c2   : > { %905 = vmatpush.msrb.mxu0 %v882_v32 }
 0x1c3   : > { %v753_v41 = vadd.f32 0.00028619796, %v752_v37  ;;  %v764_v44 = vadd.f32 0.001143296, %v763_v40  ;;  %v824_v37 = vld [vmem:[%s2116_s7] sm:$0x3] }
 0x1c4   : > { %906 = vmatpush.msrb.mxu0 %v881_v33  ;;  %v827_v38 = vperm.slane %v824_v37, 1  ;;  %v826_v43 = vperm.slane %v824_v37, 0 }
 0x1c5   : > { %v754_v45 = vmul.f32 %v753_v41, %v2039_v34  ;;  %v765_v48 = vmul.f32 %v764_v44, %v2039_v34 }
 0x1c7   : > { %v766_v51 = vadd.f32 0.014752088, %v765_v48  ;;  %v755_v52 = vadd.f32 0.0036580483, %v754_v45  ;;  %v870_v45 = vld [vmem:[%s542_s21] sm:$0xff]  ;;  %s2163_s21 = sld [smem:[#allocation35_spill]] }
 0x1c9   : > { %v767_v55 = vmul.f32 %v766_v51, %v2039_v34  ;;  %v756_v59 = vmul.f32 %v755_v52, %v2039_v34  ;;  %v974_v51 = vld [vmem:[#allocation13 + $0x70] sm:$0xff]  ;;  %v973_v52 = vld [vmem:[#allocation13 + $0x68] sm:$0xff] }
 0x1ca   : > { %981 = vmatpush.msrb.mxu1 %v974_v51 }
 0x1cb   : > { %v768_v58 = vadd.f32 0.112945676, %v767_v55  ;;  %v757_v0 = vadd.f32 0.05243302, %v756_v59  ;;  %v971_v55 = vld [vmem:[#allocation13 + $0x58] sm:$0xff] }
 0x1cc   : > { %982 = vmatpush.msrb.mxu1 %v973_v52  ;;  %v1054_v52 = vld [vmem:[#allocation14 + $0x50] sm:$0xff] }
 0x1cd   : > { %v769_v60 = vmul.f32 %v768_v58, %v2039_v34  ;;  %v758_v5 = vmul.f32 %v757_v0, %v2039_v34  ;;  %v970_v58 = vld [vmem:[#allocation13 + $0x50] sm:$0xff]  ;;  %v967_v0 = vld [vmem:[#allocation13 + $0x38] sm:$0xff] }
 0x1ce   : > { %983 = vmatpush.msrb.mxu1 %v972_v54  ;;  %v1053_v54 = vld [vmem:[#allocation14 + $0x48] sm:$0xff] }
 0x1cf   : > { %v770_v63 = vadd.f32 0.4994258, %v769_v60  ;;  %v759_v8 = vadd.f32 0.18741608, %v758_v5  ;;  %v969_v60 = vld [vmem:[#allocation13 + $0x48] sm:$0xff] }
 0x1d0   : > { %984 = vmatpush.msrb.mxu1 %v971_v55 }
 0x1d1   : > { %v771_v2 = vmul.f32 %v770_v63, %v2039_v34  ;;  %v760_v11 = vmul.f32 %v759_v8, %v2039_v34  ;;  %v880_v34 = vld [vmem:[#allocation11 + $0x20] sm:$0xff] }
 0x1d2   : > { %907 = vmatpush.msrb.mxu0 %v880_v34  ;;  %985 = vmatpush.msrb.mxu1 %v970_v58  ;;  %v1051_v58 = vld [vmem:[#allocation14 + $0x38] sm:$0xff] }
 0x1d3   : > { %v772_v4 = vadd.f32 1.0, %v771_v2  ;;  %v761_v15 = vadd.f32 1.1283791, %v760_v11 }
 0x1d4   : > { %986 = vmatpush.msrb.mxu1 %v969_v60 }
 0x1d5   : > { %1405 = vrcp.f32 %v772_v4  ;;  %v784_v14 = vand.u32 2147483648, %v772_v4  ;;  %v782_v17 = vand.u32 2147483647, %v772_v4  ;;  %vm778_vm5 = vweird.f32 %v772_v4 }
 0x1d6   : > { %v762_v20 = vmul.f32 %v761_v15, %v2035_v28  ;;  %v879_v28 = vld [vmem:[#allocation11 + $0x18] sm:$0xff]  ;;  %987 = vmatpush.msrb.mxu1 %v968_v62  ;;  %v961_v15 = vld [vmem:[#allocation13 + $0x8] sm:$0xff] }
 0x1d7   : > { %v785_v19 = vor.u32 1.1754944e-38, %v784_v14  ;;  %vm783_vm7 = vcmp.eq.f32.partialorder %v782_v17, 8.507059e+37  ;;  %908 = vmatpush.msrb.mxu0 %v879_v28  ;;  %v960_v17 = vld [vmem:[#allocation13] sm:$0xff] }
 0x1d8   : > { %988 = vmatpush.msrb.mxu1 %v967_v0  ;;  %v1049_v0 = vld [vmem:[#allocation14 + $0x28] sm:$0xff] }
 0x1d9   : > { %909 = vmatpush.msrb.mxu0 %v878_v35 }
 0x1da   : > { %989 = vmatpush.msrb.mxu1 %v966_v3  ;;  %v1048_v3 = vld [vmem:[#allocation14 + $0x20] sm:$0xff] }
 0x1db   : > { %v1406_v10 = vpop.eup %1405  ;;  %910 = vmatpush.msrb.mxu0 %v877_v36 }
 0x1dc   : > { %v774_v12 = vmul.f32 %v1406_v10, %v772_v4  ;;  %vm779_vm4 = vweird.f32 %v1406_v10  ;;  %990 = vmatpush.msrb.mxu1 %v965_v6  ;;  %v1046_v6 = vld [vmem:[#allocation14 + $0x10] sm:$0xff] }
 0x1dd   : > { %vm780_vm6 = vmor %vm778_vm5, %vm779_vm4  ;;  %911 = vmatpush.msrb.mxu0 %v876_v25 }
 0x1de   : > { %v775_v13 = vsub.f32 1.0, %v774_v12  ;;  %991 = vmatpush.msrb.mxu1 %v964_v9  ;;  %v962_v12 = vld [vmem:[#allocation13 + $0x10] sm:$0xff]  ;;  %v1045_v9 = vld [vmem:[#allocation14 + $0x8] sm:$0xff] }
 0x1e0   : > { %v776_v16 = vmul.f32 %v1406_v10, %v775_v13 }
 0x1e2   : > { %v777_v18 = vadd.f32 %v1406_v10, %v776_v16 }
 0x1e4   : > { %v781_v21 = vsel %vm780_vm6, %v1406_v10, %v777_v18  ;;  %v963_v10 = vld [vmem:[#allocation13 + $0x18] sm:$0xff] }
 0x1e5   : > { %v786_v22 = vsel %vm783_vm7, %v785_v19, %v781_v21  ;;  %992 = vmatpush.msrb.mxu1 %v963_v10 }
 0x1e6   : > { %v787_v23 = vmul.f32 %v786_v22, %v762_v20 }
 0x1e7   : > { %993 = vmatpush.msrb.mxu1 %v962_v12 }
 0x1e8   : > { %v1275_v24 = vclamps-f32 %v787_v23, 1.0 }
 0x1e9   : > { %994 = vmatpush.msrb.mxu1 %v961_v15 }
 0x1ea   : > { %v790_v27 = vadd.f32 1.0, %v1275_v24 }
 0x1eb   : > { %995 = vmatpush.msrb.mxu1 %v960_v17 }
 0x1ec   : > { %v791_v29 = vmul.f32 %v790_v27, %v748_v26 }
 0x1ee   : > { %846 = vmatmul.f32.vlgmr.msra.gmra.mxu2 %v791_v29  ;;  %866 = vmatmul.f32.vlgmr.msra.gmra.mxu3 %v791_v29 }
 0x271   : > { %v867_v39 = vpop.f32.mrf.mxu3  ;;  %v847_v44 = vpop.f32.mrf.mxu2 }
 0x272   : > { %v868_v40 = vadd.f32 %v867_v39, %v827_v38  ;;  %v848_v47 = vadd.f32 %v847_v44, %v826_v43  ;;  %v1059_v44 = vld [vmem:[#allocation14 + $0x78] sm:$0xff] }
 0x273   : > { %1064 = vmatpush.msrb.mxu2 %v1059_v44 }
 0x274   : > { %v871_v41 = vmul.f32 0.5, %v868_v40 }
 0x276   : > { %v872_v42 = vmul.f32 1.442695, %v871_v41 }
 0x278   : > { %1407 = vpow2.f32 %v872_v42 }
 0x27e   : > { %v1408_v46 = vpop.eup %1407 }
 0x27f   : > { %v874_v48 = vmul.f32 %v1408_v46, %v870_v45  ;;  %v1058_v45 = vld [vmem:[#allocation14 + $0x70] sm:$0xff]  ;;  %v1057_v46 = vld [vmem:[#allocation14 + $0x68] sm:$0xff] }
 0x280   : > { %1065 = vmatpush.msrb.mxu2 %v1058_v45 }
 0x281   : > { %v875_v49 = vadd.f32 %v874_v48, %v848_v47  ;;  %v1401_v47 = vld [vmem:[%s2120_s11] ss:$0 sm:$0xff] }
 0x282   : > { %1066 = vmatpush.msrb.mxu2 %v1057_v46  ;;  %v1056_v48 = vld [vmem:[#allocation14 + $0x60] sm:$0xff] }
 0x283   : > { %912 = vmatmul.f32.vlgmr.msrb.gmra.mxu0 %v875_v49  ;;  %v1055_v49 = vld [vmem:[#allocation14 + $0x58] sm:$0xff] }
 0x284   : > { %1067 = vmatpush.msrb.mxu2 %v1056_v48 }
 0x286   : > { %1068 = vmatpush.msrb.mxu2 %v1055_v49 }
 0x288   : > { %1069 = vmatpush.msrb.mxu2 %v1054_v52 }
 0x28a   : > { %1070 = vmatpush.msrb.mxu2 %v1053_v54 }
 0x300   : > { %v913_v56 = vpop.f32.mrf.mxu0 }
 0x301   : > { %v2061_v57 = vadd.f32 %v1400_v53, %v913_v56  ;;  %v1052_v56 = vld [vmem:[#allocation14 + $0x40] sm:$0xff] }
 0x302   : > { %1071 = vmatpush.msrb.mxu2 %v1052_v56 }
 0x303   : > { %v917_v59 = vmul.f32 0.70710677, %v2061_v57  ;;  %v916_v41 = vmul.f32 0.5, %v2061_v57 }
 0x304   : > { %1072 = vmatpush.msrb.mxu2 %v1051_v58 }
 0x305   : > { %v918_v61 = vmul.f32 %v917_v59, %v917_v59 }
 0x307   : > { %v919_v63 = vmin.f32 %v918_v61, 16.0  ;;  %v1050_v61 = vld [vmem:[#allocation14 + $0x30] sm:$0xff] }
 0x308   : > { %1073 = vmatpush.msrb.mxu2 %v1050_v61 }
 0x309   : > { %v920_v1 = vmul.f32 2.1237322e-06, %v919_v63  ;;  %v931_v2 = vmul.f32 3.8918573e-05, %v919_v63 }
 0x30a   : > { %1074 = vmatpush.msrb.mxu2 %v1049_v0 }
 0x30b   : > { %v921_v4 = vadd.f32 0.00028619796, %v920_v1  ;;  %v932_v5 = vadd.f32 0.001143296, %v931_v2 }
 0x30c   : > { %1075 = vmatpush.msrb.mxu2 %v1048_v3 }
 0x30d   : > { %v922_v7 = vmul.f32 %v921_v4, %v919_v63  ;;  %v933_v8 = vmul.f32 %v932_v5, %v919_v63  ;;  %v1047_v4 = vld [vmem:[#allocation14 + $0x18] sm:$0xff] }
 0x30e   : > { %1076 = vmatpush.msrb.mxu2 %v1047_v4 }
 0x30f   : > { %v934_v11 = vadd.f32 0.014752088, %v933_v8  ;;  %v923_v13 = vadd.f32 0.0036580483, %v922_v7 }
 0x310   : > { %1077 = vmatpush.msrb.mxu2 %v1046_v6 }
 0x311   : > { %v935_v14 = vmul.f32 %v934_v11, %v919_v63  ;;  %v924_v18 = vmul.f32 %v923_v13, %v919_v63  ;;  %v1044_v11 = vld [vmem:[#allocation14] sm:$0xff] }
 0x312   : > { %1078 = vmatpush.msrb.mxu2 %v1045_v9 }
 0x313   : > { %v936_v16 = vadd.f32 0.112945676, %v935_v14  ;;  %v925_v21 = vadd.f32 0.05243302, %v924_v18 }
 0x314   : > { %1079 = vmatpush.msrb.mxu2 %v1044_v11 }
 0x315   : > { %v937_v19 = vmul.f32 %v936_v16, %v919_v63  ;;  %v926_v24 = vmul.f32 %v925_v21, %v919_v63 }
 0x317   : > { %v938_v20 = vadd.f32 0.4994258, %v937_v19  ;;  %v927_v26 = vadd.f32 0.18741608, %v926_v24 }
 0x319   : > { %v939_v22 = vmul.f32 %v938_v20, %v919_v63  ;;  %v928_v29 = vmul.f32 %v927_v26, %v919_v63 }
 0x31b   : > { %v940_v23 = vadd.f32 1.0, %v939_v22  ;;  %v929_v33 = vadd.f32 1.1283791, %v928_v29 }
 0x31d   : > { %1409 = vrcp.f32 %v940_v23  ;;  %v952_v32 = vand.u32 2147483648, %v940_v23  ;;  %v950_v28 = vand.u32 2147483647, %v940_v23  ;;  %vm946_vm9 = vweird.f32 %v940_v23 }
 0x31e   : > { %v930_v25 = vmul.f32 %v929_v33, %v917_v59 }
 0x31f   : > { %v953_v36 = vor.u32 1.1754944e-38, %v952_v32  ;;  %vm951_vm11 = vcmp.eq.f32.partialorder %v950_v28, 8.507059e+37 }
 0x323   : > { %v1410_v27 = vpop.eup %1409 }
 0x324   : > { %v942_v30 = vmul.f32 %v1410_v27, %v940_v23  ;;  %vm947_vm8 = vweird.f32 %v1410_v27 }
 0x325   : > { %vm948_vm10 = vmor %vm946_vm9, %vm947_vm8 }
 0x326   : > { %v943_v31 = vsub.f32 1.0, %v942_v30 }
 0x328   : > { %v944_v34 = vmul.f32 %v1410_v27, %v943_v31 }
 0x32a   : > { %v945_v35 = vadd.f32 %v1410_v27, %v944_v34 }
 0x32c   : > { %v949_v37 = vsel %vm948_vm10, %v1410_v27, %v945_v35 }
 0x32d   : > { %v954_v38 = vsel %vm951_vm11, %v953_v36, %v949_v37 }
 0x32e   : > { %v955_v39 = vmul.f32 %v954_v38, %v930_v25  ;;  %v1402_v38 = vld [vmem:[%s2163_s21] ss:$0 sm:$0xff] }
 0x330   : > { %v1276_v40 = vclamps-f32 %v955_v39, 1.0 }
 0x332   : > { %v958_v42 = vadd.f32 1.0, %v1276_v40 }
 0x334   : > { %v959_v43 = vmul.f32 %v958_v42, %v916_v41 }
 0x336   : > { %996 = vmatmul.f32.vlgmr.msrb.gmra.mxu1 %v959_v43 }
 0x3b3   : > { %v997_v50 = vpop.f32.mrf.mxu1 }
 0x3b4   : > { %v2068_v51 = vadd.f32 %v1401_v47, %v997_v50 }
 0x3b6   : > { %v1001_v53 = vmul.f32 0.70710677, %v2068_v51  ;;  %v1000_v36 = vmul.f32 0.5, %v2068_v51 }
 0x3b8   : > { %v1002_v55 = vmul.f32 %v1001_v53, %v1001_v53 }
 0x3ba   : > { %v1003_v57 = vmin.f32 %v1002_v55, 16.0 }
 0x3bc   : > { %v1004_v59 = vmul.f32 2.1237322e-06, %v1003_v57  ;;  %v1015_v60 = vmul.f32 3.8918573e-05, %v1003_v57 }
 0x3be   : > { %v1005_v62 = vadd.f32 0.00028619796, %v1004_v59  ;;  %v1016_v63 = vadd.f32 0.001143296, %v1015_v60 }
 0x3c0   : > { %v1006_v1 = vmul.f32 %v1005_v62, %v1003_v57  ;;  %v1017_v2 = vmul.f32 %v1016_v63, %v1003_v57 }
 0x3c2   : > { %v1018_v5 = vadd.f32 0.014752088, %v1017_v2  ;;  %v1007_v7 = vadd.f32 0.0036580483, %v1006_v1 }
 0x3c4   : > { %v1019_v8 = vmul.f32 %v1018_v5, %v1003_v57  ;;  %v1008_v12 = vmul.f32 %v1007_v7, %v1003_v57 }
 0x3c6   : > { %v1020_v10 = vadd.f32 0.112945676, %v1019_v8  ;;  %v1009_v15 = vadd.f32 0.05243302, %v1008_v12 }
 0x3c8   : > { %v1021_v13 = vmul.f32 %v1020_v10, %v1003_v57  ;;  %v1010_v18 = vmul.f32 %v1009_v15, %v1003_v57 }
 0x3ca   : > { %v1022_v14 = vadd.f32 0.4994258, %v1021_v13  ;;  %v1011_v19 = vadd.f32 0.18741608, %v1010_v18 }
 0x3cc   : > { %v1023_v16 = vmul.f32 %v1022_v14, %v1003_v57  ;;  %v1012_v21 = vmul.f32 %v1011_v19, %v1003_v57 }
 0x3ce   : > { %v1024_v17 = vadd.f32 1.0, %v1023_v16  ;;  %v1013_v26 = vadd.f32 1.1283791, %v1012_v21 }
 0x3d0   : > { %1411 = vrcp.f32 %v1024_v17  ;;  %v1036_v24 = vand.u32 2147483648, %v1024_v17  ;;  %v1034_v29 = vand.u32 2147483647, %v1024_v17  ;;  %vm1030_vm13 = vweird.f32 %v1024_v17 }
 0x3d1   : > { %v1014_v32 = vmul.f32 %v1013_v26, %v1001_v53 }
 0x3d2   : > { %v1037_v31 = vor.u32 1.1754944e-38, %v1036_v24  ;;  %vm1035_vm15 = vcmp.eq.f32.partialorder %v1034_v29, 8.507059e+37 }
 0x3d6   : > { %v1412_v20 = vpop.eup %1411 }
 0x3d7   : > { %v1026_v22 = vmul.f32 %v1412_v20, %v1024_v17  ;;  %vm1031_vm12 = vweird.f32 %v1412_v20 }
 0x3d8   : > { %vm1032_vm14 = vmor %vm1030_vm13, %vm1031_vm12 }
 0x3d9   : > { %v1027_v23 = vsub.f32 1.0, %v1026_v22 }
 0x3db   : > { %v1028_v27 = vmul.f32 %v1412_v20, %v1027_v23 }
 0x3dd   : > { %v1029_v30 = vadd.f32 %v1412_v20, %v1028_v27 }
 0x3df   : > { %v1033_v33 = vsel %vm1032_vm14, %v1412_v20, %v1029_v30 }
 0x3e0   : > { %v1038_v34 = vsel %vm1035_vm15, %v1037_v31, %v1033_v33 }
 0x3e1   : > { %v1039_v28 = vmul.f32 %v1038_v34, %v1014_v32 }
 0x3e3   : > { %v1277_v35 = vclamps-f32 %v1039_v28, 1.0 }
 0x3e5   : > { %v1042_v25 = vadd.f32 1.0, %v1277_v35 }
 0x3e7   : > { %v1043_v37 = vmul.f32 %v1042_v25, %v1000_v36 }
 0x3e9   : > { %1080 = vmatmul.f32.vlgmr.msrb.gmra.mxu2 %v1043_v37 }
 0x46c   : > { %v1081_v39 = vpop.f32.mrf.mxu2 }
 0x46d   : > { %v1082_v40 = vadd.f32 %v1402_v38, %v1081_v39 }
 0x46f   : > { %1084 = vst [vmem:[%s622_s14] sm:$0xff] %v1082_v40 }
 0x470   : > { %1680 = shalt.err (!%p1677_p10)
}
 0x471   : > { %1310 = dma.vmem_to_hbm [thread:$0]  (%p1938_p4), %s1099_s23, 128, %s1101_s13, %s1086_s12  }
 0x472 PF: > { %s2165_s25 = sld [smem:[#allocation25_spill]]  ;;  %s1112_s17 = sand.u32 1, %s1727_s29  }
 0x473   : > { %s1113_s10 = scalar_lea.sflag [#allocation4], %s1112_s17 }
 0x478   : > { %p2166_p11 = scmp.ge.s32.totalorder %s2165_s25, 2 }
 0x47a   : > { %p1339_p5 = pnand %p2166_p11, %p1942_p6 }
 0x47c   : > { %p1340_p13 = pneg %p1339_p5 }
 0x47e   : > { %1722 = dma.done.wait (%p1340_p13), %s1113_s10, 128  }
 0x47f   : > { %1724 = vsyncadd (%p1340_p13), %s1113_s10, 4294967168  ;;  %s2167_s16 = sld [smem:[#allocation26_spill]]  ;;  %s2170_s29 = smov %s1731_s30 }
 0x480   : > { %s2168_s6 = sld [smem:[#allocation24_spill]] }
 0x481   : > { %s2169_s15 = sld [smem:[#allocation27_spill]] }
 0x485   : > { %p33_p0 = scmp.ge.s32.totalorder %s2167_s16, 4  }
 0x486   : > { %s2171_s30 = smov %s2168_s6 }
 0x487   :  { %35 = sbr.rel (!%p33_p0) target bundleno = 19 (0x13), region = 158 }
 0x48c   :  { %1119 = vsyncpa [#allocation3], 1 }
 0x48d   :  { %1121 = vsyncpa [#allocation3 + $0x1], 1 }
 0x48e   :  { %1122 = vsyncpa [#allocation6], 1 }
 0x48f   :  { %1124 = vsyncpa [#allocation6 + $0x1], 1 }
 0x490   :  { %1125 = vsyncpa [#allocation9], 1 }
 0x491   :  { %1126 = vsyncpa [#allocation12], 1 }
 0x492   :  { %1127 = vsyncpa [#allocation15], 1 }
 0x493   :  { %1128 = vsyncpa [#allocation4], 1 }
 0x494   :  { %1130 = vsyncpa [#allocation4 + $0x1], 1 }

</bundles_post_ra>
